<compile_context>
chip_gen: v6e
topology: v6e:2x2x1
jax: 0.10.0
libtpu: 0.0.40
codegen_flags: <defaults>
</compile_context>

<pallas_src>
import functools

import jax
import jax.numpy as jnp
from jax.experimental import pallas as pl
from jax.experimental.pallas import tpu as pltpu

# VMEM budget: plenty for 512-class f32 tiles double-buffered, raises v5e's
# 16 MiB scoped default, and stays below v7x's 64 MiB physical VMEM.
_VMEM_LIMIT_BYTES = 48 * 1024 * 1024

# Default tile targets; 512 is a multiple of both 8 (sublane) and 128 (lane),
# so padded-to-tile dims always satisfy the (8, 128) block constraint.
_TM, _TN, _TK = 512, 512, 512


def _choose_tile(dim: int, target: int) -> int:
    # A block equal to the full array dim is always legal (no (8,128)
    # alignment required), so small dims use a single full block; big dims
    # use the aligned target tile and the array is padded to a multiple of it.
    return dim if dim <= target else target


def _pad_axis(x: jax.Array, axis: int, multiple: int) -> jax.Array:
    pad = (-x.shape[axis]) % multiple
    if pad == 0:
        return x
    widths = [(0, 0)] * x.ndim
    widths[axis] = (0, pad)
    return jnp.pad(x, widths)


# ---------------------------------------------------------------------------
# 2-D tiled matmul:  (M, K) @ (K, N) -> (M, N), f32 accumulation on the MXU.
# Grid = (M/tm, N/tn, K/tk); K is the innermost ("arbitrary") reduction axis.
# The f32 output block is resident across K, so it doubles as the accumulator.
# ---------------------------------------------------------------------------
def _mm_kernel(a_ref, b_ref, o_ref):
    k = pl.program_id(2)
    prod = jnp.dot(a_ref[...], b_ref[...], preferred_element_type=jnp.float32)

    @pl.when(k == 0)
    def _():
        o_ref[...] = prod

    @pl.when(k != 0)
    def _():
        o_ref[...] += prod


def pallas_matmul(a: jax.Array, b: jax.Array, *,
                  tm: int = _TM, tn: int = _TN, tk: int = _TK) -> jax.Array:
    M, K = a.shape
    K2, N = b.shape
    assert K == K2, (a.shape, b.shape)
    tm = _choose_tile(M, tm)
    tn = _choose_tile(N, tn)
    tk = _choose_tile(K, tk)

    a_p = _pad_axis(_pad_axis(a, 0, tm), 1, tk)
    b_p = _pad_axis(_pad_axis(b, 0, tk), 1, tn)
    Mp, Kp = a_p.shape
    Np = b_p.shape[1]
    grid = (Mp // tm, Np // tn, Kp // tk)

    out = pl.pallas_call(
        _mm_kernel,
        out_shape=jax.ShapeDtypeStruct((Mp, Np), jnp.float32),
        grid=grid,
        in_specs=[
            pl.BlockSpec((tm, tk), lambda i, j, k: (i, k)),
            pl.BlockSpec((tk, tn), lambda i, j, k: (k, j)),
        ],
        out_specs=pl.BlockSpec((tm, tn), lambda i, j, k: (i, j)),
        compiler_params=pltpu.CompilerParams(
            dimension_semantics=("parallel", "parallel", "arbitrary"),
            vmem_limit_bytes=_VMEM_LIMIT_BYTES,
        ),
        cost_estimate=pl.CostEstimate(
            flops=2 * Mp * Np * Kp,
            bytes_accessed=4 * (Mp * Kp + Kp * Np + Mp * Np),
            transcendentals=0,
        ),
    )(a_p, b_p)
    if (Mp, Np) != (M, N):
        out = out[:M, :N]
    return out


# ---------------------------------------------------------------------------
# Batched  y[b] = W @ x[b]  with x of shape (B, H, N), read in place
# (no XLA transposes around the kernel).
# Grid = (B, H/tm, N/tn, H/tk); last axis is the K reduction.
# ---------------------------------------------------------------------------
def _bmm_kernel(w_ref, x_ref, o_ref):
    k = pl.program_id(3)
    prod = jnp.dot(w_ref[...], x_ref[0], preferred_element_type=jnp.float32)

    @pl.when(k == 0)
    def _():
        o_ref[0] = prod

    @pl.when(k != 0)
    def _():
        o_ref[0] += prod


def pallas_w_times_x_batched(w: jax.Array, x: jax.Array, *,
                             tm: int = _TM, tn: int = _TN,
                             tk: int = _TK) -> jax.Array:
    H = w.shape[0]
    B, K, N = x.shape
    assert K == H and w.shape[1] == H, (w.shape, x.shape)
    tm = _choose_tile(H, tm)
    tn = _choose_tile(N, tn)
    tk = _choose_tile(H, tk)

    w_p = _pad_axis(_pad_axis(w, 0, tm), 1, tk)
    x_p = _pad_axis(_pad_axis(x, 1, tk), 2, tn)
    Hp = w_p.shape[0]
    Kp = x_p.shape[1]
    Np = x_p.shape[2]
    grid = (B, Hp // tm, Np // tn, Kp // tk)

    # TODO(synk): for very small N the output stores are masked (lane width <
    # 128); packing B into the N tile would make them lane-dense but would
    # reintroduce an XLA transpose, which is the bigger cost on this
    # memory-bound op.
    out = pl.pallas_call(
        _bmm_kernel,
        out_shape=jax.ShapeDtypeStruct((B, Hp, Np), jnp.float32),
        grid=grid,
        in_specs=[
            pl.BlockSpec((tm, tk), lambda b, i, j, k: (i, k)),
            pl.BlockSpec((1, tk, tn), lambda b, i, j, k: (b, k, j)),
        ],
        out_specs=pl.BlockSpec((1, tm, tn), lambda b, i, j, k: (b, i, j)),
        compiler_params=pltpu.CompilerParams(
            dimension_semantics=("parallel", "parallel", "parallel",
                                 "arbitrary"),
            vmem_limit_bytes=_VMEM_LIMIT_BYTES,
        ),
        cost_estimate=pl.CostEstimate(
            flops=2 * B * Hp * Np * Kp,
            bytes_accessed=4 * (Hp * Kp + B * Kp * Np + B * Hp * Np),
            transcendentals=0,
        ),
    )(w_p, x_p)
    if (Hp, Np) != (H, N):
        out = out[:, :H, :N]
    return out


# ---------------------------------------------------------------------------
# RotateModule.forward equivalent.
# ---------------------------------------------------------------------------
@functools.partial(jax.jit, static_argnames=("transpose",))
def rotate_forward(x: jax.Array, weight: jax.Array, transpose: bool = False):
    H = weight.shape[0]
    weight = weight.astype(jnp.float32)
    x = x.astype(jnp.float32)

    if transpose:
        # x @ W : hidden on the last axis; flatten leading dims into M.
        lead = x.shape[:-1]
        x2d = x.reshape(-1, H)
        y = pallas_matmul(x2d, weight)
        return y.reshape(lead + (H,))
    else:
        # W @ x : hidden on axis -2 (PyTorch matmul broadcasting over leading
        # batch dims).
        if x.ndim == 1:
            y = pallas_matmul(weight, x.reshape(H, 1))
            return y.reshape(H)
        if x.ndim == 2:
            return pallas_matmul(weight, x)
        lead = x.shape[:-2]
        N = x.shape[-1]
        x3d = x.reshape((-1, H, N))
        y = pallas_w_times_x_batched(weight, x3d)
        return y.reshape(lead + (H, N))


def make_rotation_matrix(key, H: int) -> jnp.ndarray:
    """Deterministic random orthogonal (rotation) matrix, stands in for R_init."""
    g = jax.random.normal(key, (H, H), dtype=jnp.float32)
    q, r = jnp.linalg.qr(g)
    q = q * jnp.sign(jnp.diag(r))[None, :]
    return q.astype(jnp.float32)


if __name__ == "__main__":
    key = jax.random.PRNGKey(0)
    k_w, k_x1, k_x2, k_x3 = jax.random.split(key, 4)

    H = 128           # hidden size (rotation dim)
    B, S = 2, 8       # batch, seq for the x @ W path
    N = 16            # columns for the W @ x path

    weight = make_rotation_matrix(k_w, H)                      # (H, H) f32

    # transpose=True path: x @ W, hidden last.
    x_t = jax.random.normal(k_x1, (B, S, H), dtype=jnp.float32)
    y_t = jax.block_until_ready(rotate_forward(x_t, weight, transpose=True))
    ref_t = jnp.einsum("bsh,hk->bsk", x_t, weight)

    # transpose=False path: W @ x, hidden on axis -2, batched.
    x_n = jax.random.normal(k_x2, (B, H, N), dtype=jnp.float32)
    y_n = jax.block_until_ready(rotate_forward(x_n, weight, transpose=False))
    ref_n = jnp.einsum("hk,bkn->bhn", weight, x_n)

    # transpose=False path: 2-D W @ x.
    x_2d = jax.random.normal(k_x3, (H, N), dtype=jnp.float32)
    y_2d = jax.block_until_ready(rotate_forward(x_2d, weight, transpose=False))
    ref_2d = weight @ x_2d

    # transpose=True with an irregular token count (M = 3*5 = 15).
    x_ir = jax.random.normal(k_x1, (3, 5, H), dtype=jnp.float32)
    y_ir = jax.block_until_ready(rotate_forward(x_ir, weight, transpose=True))
    ref_ir = jnp.einsum("bsh,hk->bsk", x_ir, weight)

    assert y_t.shape == (B, S, H) and y_t.dtype == jnp.float32
    assert y_n.shape == (B, H, N) and y_n.dtype == jnp.float32
    assert y_2d.shape == (H, N)
    assert y_ir.shape == (3, 5, H)
    assert jnp.allclose(y_t, ref_t, atol=1e-3, rtol=1e-3)
    assert jnp.allclose(y_n, ref_n, atol=1e-3, rtol=1e-3)
    assert jnp.allclose(y_2d, ref_2d, atol=1e-3, rtol=1e-3)
    assert jnp.allclose(y_ir, ref_ir, atol=1e-3, rtol=1e-3)

    print("KERNEL_OK")
</pallas_src>

<mosaic_0001>
module attributes {stable_mosaic.version = 11 : i64} {
  func.func @_mm_kernel(%arg0: i32, %arg1: i32, %arg2: i32, %arg3: memref<16x128xf32, #tpu.memory_space<vmem>>, %arg4: memref<128x128xf32, #tpu.memory_space<vmem>>, %arg5: memref<16x128xf32, #tpu.memory_space<vmem>>) attributes {dimension_semantics = [#tpu.dimension_semantics<parallel>, #tpu.dimension_semantics<parallel>, #tpu.dimension_semantics<arbitrary>], iteration_bounds = array<i64: 1, 1, 1>, scalar_prefetch = 0 : i64, scratch_operands = 0 : i64, tpu.core_type = #tpu.core_type<tc>, window_params = [{transform_indices = @transform_0, window_bounds = array<i64: 16, 128>}, {transform_indices = @transform_1, window_bounds = array<i64: 128, 128>}, {transform_indices = @transform_2, window_bounds = array<i64: 16, 128>}]} {
    %c0 = arith.constant 0 : index
    %c0_0 = arith.constant 0 : index
    %0 = vector.load %arg3[%c0, %c0_0] : memref<16x128xf32, #tpu.memory_space<vmem>>, vector<16x128xf32>
    %c0_1 = arith.constant 0 : index
    %c0_2 = arith.constant 0 : index
    %1 = vector.load %arg4[%c0_1, %c0_2] : memref<128x128xf32, #tpu.memory_space<vmem>>, vector<128x128xf32>
    %cst = arith.constant dense<0.000000e+00> : vector<16x128xf32>
    %2 = tpu.matmul %0, %1, %cst {dimension_numbers = #tpu.dot_dimension_numbers<[1], [0], [0], [1], [0, 0, 1, 1], [], []>} : vector<16x128xf32>, vector<128x128xf32>, vector<16x128xf32> -> vector<16x128xf32>
    %c0_i32 = arith.constant 0 : i32
    %3 = arith.cmpi eq, %arg2, %c0_i32 : i32
    %4 = arith.extui %3 : i1 to i32
    %c0_i32_3 = arith.constant 0 : i32
    %5 = arith.cmpi ne, %4, %c0_i32_3 : i32
    scf.if %5 {
      %c0_6 = arith.constant 0 : index
      %c0_7 = arith.constant 0 : index
      %9 = vector.load %arg5[%c0_6, %c0_7] : memref<16x128xf32, #tpu.memory_space<vmem>>, vector<16x128xf32>
      tpu.vector_store %arg5[%c0_6, %c0_7], %2 {strides = array<i32>} : memref<16x128xf32, #tpu.memory_space<vmem>>, vector<16x128xf32>,
    } else {
    }
    %c0_i32_4 = arith.constant 0 : i32
    %6 = arith.cmpi ne, %arg2, %c0_i32_4 : i32
    %7 = arith.extui %6 : i1 to i32
    %c0_i32_5 = arith.constant 0 : i32
    %8 = arith.cmpi ne, %7, %c0_i32_5 : i32
    scf.if %8 {
      %c0_6 = arith.constant 0 : index
      %c0_7 = arith.constant 0 : index
      %9 = vector.load %arg5[%c0_6, %c0_7] : memref<16x128xf32, #tpu.memory_space<vmem>>, vector<16x128xf32>
      %10 = arith.addf %9, %2 : vector<16x128xf32>
      %c0_8 = arith.constant 0 : index
      %c0_9 = arith.constant 0 : index
      %11 = vector.load %arg5[%c0_8, %c0_9] : memref<16x128xf32, #tpu.memory_space<vmem>>, vector<16x128xf32>
      tpu.vector_store %arg5[%c0_8, %c0_9], %10 {strides = array<i32>} : memref<16x128xf32, #tpu.memory_space<vmem>>, vector<16x128xf32>,
    } else {
    }
    return
  }
  func.func @transform_0(%arg0: i32, %arg1: i32, %arg2: i32) -> (i32, i32) {
    %c0_i32 = arith.constant 0 : i32
    return %arg0, %arg2 : i32, i32
  }
  func.func @transform_1(%arg0: i32, %arg1: i32, %arg2: i32) -> (i32, i32) {
    %c0_i32 = arith.constant 0 : i32
    return %arg2, %arg1 : i32, i32
  }
  func.func @transform_2(%arg0: i32, %arg1: i32, %arg2: i32) -> (i32, i32) {
    %c0_i32 = arith.constant 0 : i32
    return %arg0, %arg1 : i32, i32
  }
}

</mosaic_0001>

<bundles_post_ra>
// kernel: rotate_forward.1
= control target key start
LH: loop header
LB: loop body
LE: loop exit
PB: predicated region body
PF: predicated region fallthrough
CT: control target
= control target key end

     0   :  { %7 = vsyncpa [#allocation3], 0  ;;  %s329_s0 = inlined_call_operand.hbm [shape: f32[16,128], index: 0, kind: input, shape index: {}]   ;;  %s330_s1 = inlined_call_operand.hbm [shape: f32[128,128], index: 1, kind: input, shape index: {}]   ;;  %s331_s2 = inlined_call_operand.hbm [shape: f32[16,128], index: 2, kind: output, shape index: {}]  }
   0x1   :  { %8 = vsyncpa [#allocation6], 0 }
   0x2   :  { %9 = vsyncpa [#allocation4], 0  ;;  %s291_s9 = smov [#allocation2]  }
   0x3   :  { %s15_s10 = sshll.u32 %s291_s9, 4  ;;  %s16_s10 = int_to_ptr.vmem [resolvable:$true] %s15_s10 }
   0x4   :  { %s233_s11 = scalar_lea.vmem %s16_s10, 256  ;;  %p238_p1 = scmp.lt.s32.totalorder %s16_s10, %s16_s10 }
   0x5   :  { %p234_p0 = scmp.ne.s32.totalorder %s16_s10, %s233_s11  ;;  %p239_p2 = scmp.lt.s32.totalorder %s233_s11, %s233_s11 }
   0x7   :  { %p240_p3 = por %p239_p2, %p238_p1 }
   0x9   :  { %p241_p4 = pnand %p240_p3, %p234_p0 }
   0xb   :  { %244 = shalt.err (!%p241_p4)
}
   0xc   :  { %s292_s12 = smov 128   ;;  %s293_s13 = smov 8  }
   0xd   :  { %21 = dma.hbm_to_vmem [thread:$0]  %s329_s0, 256, %s16_s10, [#allocation3], %s292_s12, %s292_s12, %s293_s13  }
   0xe   :  { %s294_s16 = smov [#allocation5]  }
   0xf   :  { %s27_s17 = sshll.u32 %s294_s16, 4  ;;  %s28_s17 = int_to_ptr.vmem [resolvable:$true] %s27_s17 }
  0x10   :  { %s253_s18 = scalar_lea.vmem %s28_s17, 2048  ;;  %p258_p6 = scmp.lt.s32.totalorder %s28_s17, %s28_s17 }
  0x11   :  { %p254_p5 = scmp.ne.s32.totalorder %s28_s17, %s253_s18  ;;  %p259_p7 = scmp.lt.s32.totalorder %s253_s18, %s253_s18 }
  0x13   :  { %p260_p8 = por %p259_p7, %p258_p6 }
  0x15   :  { %p261_p9 = pnand %p260_p8, %p254_p5 }
  0x17   :  { %264 = shalt.err (!%p261_p9)
}
  0x18   :  { %33 = dma.hbm_to_vmem [thread:$0]  %s330_s1, 2048, %s28_s17, [#allocation6], %s292_s12, %s292_s12, %s293_s13  }
  0x19   :  { %285 = dma.done.wait [#allocation3], 256  }
  0x1a   :  { %286 = vsyncadd [#allocation3], 4294967040 }
  0x1b   :  { %287 = dma.done.wait [#allocation6], 2048  }
  0x1c   :  { %288 = vsyncadd [#allocation6], 4294965248  ;;  %v57_v0 = vld [vmem:[#allocation5 + $0x78] sm:$0xff]  ;;  %v56_v1 = vld [vmem:[#allocation5 + $0x70] sm:$0xff]  ;;  %s295_s0 = smov [#allocation7]  }
  0x1d   :  { %185 = vmatprep.subr.mxu0 %v57_v0  ;;  %v55_v2 = vld [vmem:[#allocation5 + $0x68] sm:$0xff]  ;;  %v54_v3 = vld [vmem:[#allocation5 + $0x60] sm:$0xff]  ;;  %v40_v4 = vld [vmem:[#allocation2] sm:$0xff]  ;;  %s154_s1 = sshll.u32 %s295_s0, 4  ;;  %s155_s1 = int_to_ptr.vmem [resolvable:$true] %s154_s1 }
  0x1e   :  { %186 = vmatpush3.msra.mxu0 %v57_v0  ;;  %v53_v5 = vld [vmem:[#allocation5 + $0x58] sm:$0xff]  ;;  %217 = vmatprep.mubr.f32.mxu0 %v40_v4  ;;  %v52_v6 = vld [vmem:[#allocation5 + $0x50] sm:$0xff]  ;;  %v51_v7 = vld [vmem:[#allocation5 + $0x48] sm:$0xff]  ;;  %s265_s21 = scalar_lea.vmem %s155_s1, 256  ;;  %p270_p11 = scmp.lt.s32.totalorder %s155_s1, %s155_s1 }
  0x1f   :  { %187 = vmatprep.subr.mxu0 %v56_v1  ;;  %v50_v8 = vld [vmem:[#allocation5 + $0x40] sm:$0xff]  ;;  %v49_v9 = vld [vmem:[#allocation5 + $0x38] sm:$0xff]  ;;  %v48_v10 = vld [vmem:[#allocation5 + $0x30] sm:$0xff]  ;;  %p266_p10 = scmp.ne.s32.totalorder %s155_s1, %s265_s21  ;;  %p271_p12 = scmp.lt.s32.totalorder %s265_s21, %s265_s21 }
  0x20   :  { %188 = vmatpush3.msra.mxu0 %v56_v1  ;;  %v47_v11 = vld [vmem:[#allocation5 + $0x28] sm:$0xff]  ;;  %v46_v12 = vld [vmem:[#allocation5 + $0x20] sm:$0xff]  ;;  %v45_v13 = vld [vmem:[#allocation5 + $0x18] sm:$0xff] }
  0x21   :  { %189 = vmatprep.subr.mxu0 %v55_v2  ;;  %v44_v14 = vld [vmem:[#allocation5 + $0x10] sm:$0xff]  ;;  %v43_v15 = vld [vmem:[#allocation5 + $0x8] sm:$0xff]  ;;  %v42_v16 = vld [vmem:[#allocation5] sm:$0xff]  ;;  %p272_p13 = por %p271_p12, %p270_p11 }
  0x22   :  { %190 = vmatpush3.msra.mxu0 %v55_v2  ;;  %v41_v17 = vld [vmem:[#allocation2 + $0x8] sm:$0xff] }
  0x23   :  { %191 = vmatprep.subr.mxu0 %v54_v3  ;;  %p273_p0 = pnand %p272_p13, %p266_p10 }
  0x24   :  { %192 = vmatpush3.msra.mxu0 %v54_v3 }
  0x25   :  { %193 = vmatprep.subr.mxu0 %v53_v5 }
  0x26   :  { %194 = vmatpush3.msra.mxu0 %v53_v5 }
  0x27   :  { %195 = vmatprep.subr.mxu0 %v52_v6 }
  0x28   :  { %196 = vmatpush3.msra.mxu0 %v52_v6 }
  0x29   :  { %197 = vmatprep.subr.mxu0 %v51_v7 }
  0x2a   :  { %198 = vmatpush3.msra.mxu0 %v51_v7 }
  0x2b   :  { %199 = vmatprep.subr.mxu0 %v50_v8 }
  0x2c   :  { %200 = vmatpush3.msra.mxu0 %v50_v8 }
  0x2d   :  { %201 = vmatprep.subr.mxu0 %v49_v9 }
  0x2e   :  { %202 = vmatpush3.msra.mxu0 %v49_v9 }
  0x2f   :  { %203 = vmatprep.subr.mxu0 %v48_v10 }
  0x30   :  { %204 = vmatpush3.msra.mxu0 %v48_v10 }
  0x31   :  { %205 = vmatprep.subr.mxu0 %v47_v11 }
  0x32   :  { %206 = vmatpush3.msra.mxu0 %v47_v11 }
  0x33   :  { %207 = vmatprep.subr.mxu0 %v46_v12 }
  0x34   :  { %208 = vmatpush3.msra.mxu0 %v46_v12 }
  0x35   :  { %209 = vmatprep.subr.mxu0 %v45_v13 }
  0x36   :  { %210 = vmatpush3.msra.mxu0 %v45_v13 }
  0x37   :  { %211 = vmatprep.subr.mxu0 %v44_v14 }
  0x38   :  { %212 = vmatpush3.msra.mxu0 %v44_v14 }
  0x39   :  { %213 = vmatprep.subr.mxu0 %v43_v15 }
  0x3a   :  { %214 = vmatpush3.msra.mxu0 %v43_v15 }
  0x3b   :  { %215 = vmatprep.subr.mxu0 %v42_v16 }
  0x3c   :  { %216 = vmatpush3.msra.mxu0 %v42_v16 }
  0x3d   :  { %218 = vmatmul.mubr.f32.vlgmr.msra.gmra.mxu0 %v41_v17 }
  0xfd   :  { %v219_v18 = vpop.f32.mrf.mxu0 }
  0xfe   :  { %138 = vst [vmem:[#allocation7 + $0x8] sm:$0xff] %v219_v18 }
  0xff   :  { %v124_v19 = vpop.f32.mrf.mxu0 }
 0x100   :  { %137 = vst [vmem:[#allocation7] sm:$0xff] %v124_v19 }
 0x101   :  { %276 = shalt.err (!%p273_p0)
}
 0x102   :  { %160 = dma.vmem_to_hbm [thread:$0]  %s155_s1, 256, %s331_s2, [#allocation4], %s292_s12, %s292_s12, %s293_s13  }
 0x103   :  { %289 = dma.done.wait [#allocation4], 256  }
 0x104   :  { %290 = vsyncadd [#allocation4], 4294967040 }
 0x105   :  { %164 = vsyncpa [#allocation3], 1 }
 0x106   :  { %165 = vsyncpa [#allocation6], 1 }
 0x107   :  { %166 = vsyncpa [#allocation4], 1 }

</bundles_post_ra>
